<compile_context>
chip_gen: v7x
topology: tpu7x:2x2x1
jax: 0.10.0
libtpu: 0.0.40
codegen_flags: <defaults>
</compile_context>

<pallas_src>
import jax
import jax.numpy as jnp
from jax.experimental import pallas as pl
from jax.experimental.pallas import tpu as pltpu


def _round_up(x, m):
    return ((x + m - 1) // m) * m


def fc_kernel(x_ref, vt_ref, s_ref, b_ref, o_ref, acc_ref):
    # x_ref:  (tb, tk)  bf16
    # vt_ref: (tk, tn)  bf16
    # s_ref:  (1,  tn)  f32   per-output-column weight_norm scale g/||v||
    # b_ref:  (1,  tn)  f32   bias
    # o_ref:  (tb, tn)  f32
    # acc_ref:(tb, tn)  f32   scratch accumulator (resident across K steps)
    k = pl.program_id(2)

    @pl.when(k == 0)
    def _():
        acc_ref[...] = jnp.zeros_like(acc_ref)

    acc_ref[...] += jnp.dot(x_ref[...], vt_ref[...],
                            preferred_element_type=jnp.float32)

    @pl.when(k == pl.num_programs(2) - 1)
    def _():
        y = acc_ref[...] * s_ref[...] + b_ref[...]
        o_ref[...] = jnp.maximum(y, 0.0).astype(o_ref.dtype)


def fc_layer_forward(x, v, g, b, *, block_batch=512, block_out=512, block_in=512):
    """Eval-mode FCLayer forward.

    x: [B, IN] float32
    v: [OUT, IN]  weight_norm direction parameter
    g: [OUT]      weight_norm magnitude parameter
    b: [OUT]      bias
    returns: [B, OUT] float32
    """
    B, IN = x.shape
    OUT, IN2 = v.shape
    assert IN == IN2, "shape mismatch between x and v"

    # weight_norm (dim=0 for nn.Linear): w[o, :] = g[o] * v[o, :] / ||v[o, :]||_2
    # Fold the per-row scale into a per-output-column epilogue scale instead of
    # materializing w and w.T in HBM.  (No epsilon -- matches raw torch weight_norm.)
    row_norm = jnp.sqrt(jnp.sum(v.astype(jnp.float32) ** 2, axis=1))
    s = g.astype(jnp.float32) / row_norm                       # [OUT]

    # Tile sizes: clamp large defaults down to the (padded) problem size.
    tb = min(block_batch, _round_up(B, 8))     # sublane dim: multiple of 8
    tn = min(block_out, _round_up(OUT, 128))   # lane dim: multiple of 128 (lane-dense store)
    tk = min(block_in, _round_up(IN, 128))     # lane dim of x tile: multiple of 128

    B_p = _round_up(B, tb)
    OUT_p = _round_up(OUT, tn)
    IN_p = _round_up(IN, tk)

    # bf16 MXU operands, zero-padded to tile-aligned shapes (zeros are matmul-neutral).
    x_p = jnp.pad(x.astype(jnp.bfloat16), ((0, B_p - B), (0, IN_p - IN)))
    vt_p = jnp.pad(v.T.astype(jnp.bfloat16), ((0, IN_p - IN), (0, OUT_p - OUT)))
    s_p = jnp.pad(s.reshape(1, OUT), ((0, 0), (0, OUT_p - OUT)))
    b_p = jnp.pad(b.astype(jnp.float32).reshape(1, OUT), ((0, 0), (0, OUT_p - OUT)))

    grid = (B_p // tb, OUT_p // tn, IN_p // tk)   # K (reduction) innermost

    out = pl.pallas_call(
        fc_kernel,
        out_shape=jax.ShapeDtypeStruct((B_p, OUT_p), jnp.float32),
        grid_spec=pltpu.PrefetchScalarGridSpec(
            num_scalar_prefetch=0,
            grid=grid,
            in_specs=[
                pl.BlockSpec((tb, tk), lambda i, j, k: (i, k)),   # x tile
                pl.BlockSpec((tk, tn), lambda i, j, k: (k, j)),   # v.T tile
                pl.BlockSpec((1, tn), lambda i, j, k: (0, j)),    # weight_norm scale
                pl.BlockSpec((1, tn), lambda i, j, k: (0, j)),    # bias
            ],
            out_specs=pl.BlockSpec((tb, tn), lambda i, j, k: (i, j)),
            scratch_shapes=[pltpu.VMEM((tb, tn), jnp.float32)],
        ),
        compiler_params=pltpu.CompilerParams(
            dimension_semantics=("parallel", "parallel", "arbitrary"),
        ),
    )(x_p, vt_p, s_p, b_p)

    return out[:B, :OUT]


def reference_forward(x, v, g, b):
    # Pure f32 reference matching the PyTorch module math (eval mode).
    row_norm = jnp.sqrt(jnp.sum(v ** 2, axis=1, keepdims=True))
    w = g[:, None] * v / row_norm
    y = x @ w.T + b[None, :]
    return jnp.maximum(y, 0.0)


if __name__ == "__main__":
    # Small shapes consistent with the module: FCLayer(input_units=32, output_units=64)
    B, IN, OUT = 8, 32, 64

    key = jax.random.PRNGKey(0)
    kx, kv, kb = jax.random.split(key, 3)

    x = jax.random.normal(kx, (B, IN), dtype=jnp.float32)

    # Deterministic parameter init (mimicking nn.Linear + weight_norm):
    #   v ~ U(-1/sqrt(IN), 1/sqrt(IN)); g initialized to ||v||_row (so w == v initially);
    #   b ~ U(-1/sqrt(IN), 1/sqrt(IN)).
    bound = 1.0 / jnp.sqrt(jnp.float32(IN))
    v = jax.random.uniform(kv, (OUT, IN), minval=-bound, maxval=bound, dtype=jnp.float32)
    g = jnp.sqrt(jnp.sum(v ** 2, axis=1))
    b = jax.random.uniform(kb, (OUT,), minval=-bound, maxval=bound, dtype=jnp.float32)

    out = fc_layer_forward(x, v, g, b)
    out = jax.block_until_ready(out)

    ref = reference_forward(x, v, g, b)
    assert out.shape == (B, OUT)
    # bf16 MXU operands with f32 accumulation: compare to the f32 reference with a
    # tolerance appropriate for bf16 input rounding.
    assert jnp.allclose(out, ref, atol=5e-2, rtol=5e-2), "mismatch vs reference"

    print("KERNEL_OK")
</pallas_src>

<mosaic_0001>
module attributes {stable_mosaic.version = 11 : i64} {
  func.func @fc_kernel(%arg0: i32, %arg1: i32, %arg2: i32, %arg3: memref<8x128xbf16, #tpu.memory_space<vmem>>, %arg4: memref<128x128xbf16, #tpu.memory_space<vmem>>, %arg5: memref<1x128xf32, #tpu.memory_space<vmem>>, %arg6: memref<1x128xf32, #tpu.memory_space<vmem>>, %arg7: memref<8x128xf32, #tpu.memory_space<vmem>>, %arg8: memref<8x128xf32, #tpu.memory_space<vmem>>) attributes {dimension_semantics = [#tpu.dimension_semantics<parallel>, #tpu.dimension_semantics<parallel>, #tpu.dimension_semantics<arbitrary>], iteration_bounds = array<i64: 1, 1, 1>, scalar_prefetch = 0 : i64, scratch_operands = 1 : i64, tpu.core_type = #tpu.core_type<tc>, window_params = [{transform_indices = @transform_0, window_bounds = array<i64: 8, 128>}, {transform_indices = @transform_1, window_bounds = array<i64: 128, 128>}, {transform_indices = @transform_2, window_bounds = array<i64: 1, 128>}, {transform_indices = @transform_3, window_bounds = array<i64: 1, 128>}, {transform_indices = @transform_4, window_bounds = array<i64: 8, 128>}]} {
    %c0_i32 = arith.constant 0 : i32
    %0 = arith.cmpi eq, %arg2, %c0_i32 : i32
    %1 = arith.extui %0 : i1 to i32
    %c0_i32_0 = arith.constant 0 : i32
    %2 = arith.cmpi ne, %1, %c0_i32_0 : i32
    scf.if %2 {
      %cst_10 = arith.constant 0.000000e+00 : f32
      %12 = vector.broadcast %cst_10 : f32 to vector<8x128xf32>
      %c0_11 = arith.constant 0 : index
      %c0_12 = arith.constant 0 : index
      %13 = vector.load %arg8[%c0_11, %c0_12] : memref<8x128xf32, #tpu.memory_space<vmem>>, vector<8x128xf32>
      tpu.vector_store %arg8[%c0_11, %c0_12], %12 {strides = array<i32>} : memref<8x128xf32, #tpu.memory_space<vmem>>, vector<8x128xf32>,
    } else {
    }
    %c0 = arith.constant 0 : index
    %c0_1 = arith.constant 0 : index
    %3 = vector.load %arg8[%c0, %c0_1] : memref<8x128xf32, #tpu.memory_space<vmem>>, vector<8x128xf32>
    %c0_2 = arith.constant 0 : index
    %c0_3 = arith.constant 0 : index
    %4 = vector.load %arg3[%c0_2, %c0_3] : memref<8x128xbf16, #tpu.memory_space<vmem>>, vector<8x128xbf16>
    %c0_4 = arith.constant 0 : index
    %c0_5 = arith.constant 0 : index
    %5 = vector.load %arg4[%c0_4, %c0_5] : memref<128x128xbf16, #tpu.memory_space<vmem>>, vector<128x128xbf16>
    %cst = arith.constant dense<0.000000e+00> : vector<8x128xf32>
    %6 = tpu.matmul %4, %5, %cst {dimension_numbers = #tpu.dot_dimension_numbers<[1], [0], [0], [1], [0, 0, 1, 1], [], []>} : vector<8x128xbf16>, vector<128x128xbf16>, vector<8x128xf32> -> vector<8x128xf32>
    %7 = arith.addf %3, %6 : vector<8x128xf32>
    %c0_6 = arith.constant 0 : index
    %c0_7 = arith.constant 0 : index
    %8 = vector.load %arg8[%c0_6, %c0_7] : memref<8x128xf32, #tpu.memory_space<vmem>>, vector<8x128xf32>
    tpu.vector_store %arg8[%c0_6, %c0_7], %7 {strides = array<i32>} : memref<8x128xf32, #tpu.memory_space<vmem>>, vector<8x128xf32>,
    %c0_i32_8 = arith.constant 0 : i32
    %9 = arith.cmpi eq, %arg2, %c0_i32_8 : i32
    %10 = arith.extui %9 : i1 to i32
    %c0_i32_9 = arith.constant 0 : i32
    %11 = arith.cmpi ne, %10, %c0_i32_9 : i32
    scf.if %11 {
      %c0_10 = arith.constant 0 : index
      %c0_11 = arith.constant 0 : index
      %12 = vector.load %arg8[%c0_10, %c0_11] : memref<8x128xf32, #tpu.memory_space<vmem>>, vector<8x128xf32>
      %c0_12 = arith.constant 0 : index
      %c0_13 = arith.constant 0 : index
      %13 = vector.load %arg5[%c0_12, %c0_13] : memref<1x128xf32, #tpu.memory_space<vmem>>, vector<1x128xf32>
      %14 = vector.broadcast %13 : vector<1x128xf32> to vector<8x128xf32>
      %15 = arith.mulf %12, %14 : vector<8x128xf32>
      %c0_14 = arith.constant 0 : index
      %c0_15 = arith.constant 0 : index
      %16 = vector.load %arg6[%c0_14, %c0_15] : memref<1x128xf32, #tpu.memory_space<vmem>>, vector<1x128xf32>
      %17 = vector.broadcast %16 : vector<1x128xf32> to vector<8x128xf32>
      %18 = arith.addf %15, %17 : vector<8x128xf32>
      %cst_16 = arith.constant 0.000000e+00 : f32
      %19 = vector.broadcast %cst_16 : f32 to vector<8x128xf32>
      %20 = arith.maximumf %18, %19 : vector<8x128xf32>
      %c0_17 = arith.constant 0 : index
      %c0_18 = arith.constant 0 : index
      %21 = vector.load %arg7[%c0_17, %c0_18] : memref<8x128xf32, #tpu.memory_space<vmem>>, vector<8x128xf32>
      tpu.vector_store %arg7[%c0_17, %c0_18], %20 {strides = array<i32>} : memref<8x128xf32, #tpu.memory_space<vmem>>, vector<8x128xf32>,
    } else {
    }
    return
  }
  func.func @transform_0(%arg0: i32, %arg1: i32, %arg2: i32) -> (i32, i32) {
    %c0_i32 = arith.constant 0 : i32
    return %arg0, %arg2 : i32, i32
  }
  func.func @transform_1(%arg0: i32, %arg1: i32, %arg2: i32) -> (i32, i32) {
    %c0_i32 = arith.constant 0 : i32
    return %arg2, %arg1 : i32, i32
  }
  func.func @transform_2(%arg0: i32, %arg1: i32, %arg2: i32) -> (i32, i32) {
    %c0_i32 = arith.constant 0 : i32
    %c0_i32_0 = arith.constant 0 : i32
    return %c0_i32, %arg1 : i32, i32
  }
  func.func @transform_3(%arg0: i32, %arg1: i32, %arg2: i32) -> (i32, i32) {
    %c0_i32 = arith.constant 0 : i32
    %c0_i32_0 = arith.constant 0 : i32
    return %c0_i32, %arg1 : i32, i32
  }
  func.func @transform_4(%arg0: i32, %arg1: i32, %arg2: i32) -> (i32, i32) {
    %c0_i32 = arith.constant 0 : i32
    return %arg0, %arg1 : i32, i32
  }
}

</mosaic_0001>

<bundles_post_ra>
// kernel: tpu_custom_call.1
= control target key start
LH: loop header
LB: loop body
LE: loop exit
PB: predicated region body
PF: predicated region fallthrough
CT: control target
= control target key end

     0   :  { %9 = vsyncpa [#allocation4], 0  ;;  %s403_s0 = inlined_call_operand.hbm [shape: bf16[8,128], index: 0, kind: input, shape index: {}]   ;;  %s404_s1 = inlined_call_operand.hbm [shape: bf16[128,128], index: 1, kind: input, shape index: {}]   ;;  %s405_s2 = inlined_call_operand.vmem [shape: f32[1,128], index: 2, kind: input, shape index: {}]   ;;  %s406_s3 = inlined_call_operand.vmem [shape: f32[1,128], index: 3, kind: input, shape index: {}]   ;;  %s407_s4 = inlined_call_operand.hbm [shape: f32[8,128], index: 4, kind: output, shape index: {}]  }
   0x1   :  { %10 = vsyncpa [#allocation7], 0 }
   0x2   :  { %11 = vsyncpa [#allocation5], 0  ;;  %s322_s15 = smov [#allocation3]   ;;  %s323_s17 = smov [#allocation6]  }
   0x3   :  { %s18_s16 = sshll.u32 %s322_s15, 4  ;;  %s27_s18 = sshll.u32 %s323_s17, 4  ;;  %s19_s16 = int_to_ptr.vmem [resolvable:$true] %s18_s16  ;;  %s354_s18 = int_to_ptr.vmem [resolvable:$true] %s27_s18 }
   0x4   :  { %s250_s21 = scalar_lea.hbm %s403_s0, 64 }
   0x5   :  { %p251_p0 = scmp.ne.s32.totalorder %s403_s0, %s250_s21  ;;  %p254_p1 = scmp.lt.u32.totalorder %s250_s21, %s403_s0 }
   0x7   :  { %p256_p2 = pnand %p254_p1, %p251_p0 }
   0x9   :  { %259 = shalt.err (!%p256_p2)
}
   0xa   :  { %s260_s26 = scalar_lea.vmem %s19_s16, 64  ;;  %p265_p4 = scmp.lt.s32.totalorder %s19_s16, %s19_s16 }
   0xb   :  { %p261_p3 = scmp.ne.s32.totalorder %s19_s16, %s260_s26  ;;  %p266_p5 = scmp.lt.s32.totalorder %s260_s26, %s260_s26 }
   0xd   :  { %p267_p6 = por %p266_p5, %p265_p4 }
   0xf   :  { %p268_p7 = pnand %p267_p6, %p261_p3 }
  0x11   :  { %271 = shalt.err (!%p268_p7)
}
  0x12   :  { %21 = dma.hbm_to_vmem [thread:$0]  %s403_s0, 64, %s19_s16, [#allocation4]  }
  0x13   :  { %s272_s5 = scalar_lea.hbm %s404_s1, 1024 }
  0x14   :  { %p273_p8 = scmp.ne.s32.totalorder %s404_s1, %s272_s5  ;;  %p276_p9 = scmp.lt.u32.totalorder %s272_s5, %s404_s1 }
  0x16   :  { %p278_p10 = pnand %p276_p9, %p273_p8 }
  0x18   :  { %281 = shalt.err (!%p278_p10)
}
  0x19   :  { %s282_s10 = scalar_lea.vmem %s354_s18, 1024  ;;  %p287_p12 = scmp.lt.s32.totalorder %s354_s18, %s354_s18 }
  0x1a   :  { %p283_p11 = scmp.ne.s32.totalorder %s354_s18, %s282_s10  ;;  %p288_p13 = scmp.lt.s32.totalorder %s282_s10, %s282_s10 }
  0x1c   :  { %p289_p0 = por %p288_p13, %p287_p12 }
  0x1e   :  { %p290_p1 = pnand %p289_p0, %p283_p11 }
  0x20   :  { %293 = shalt.err (!%p290_p1)
}
  0x21   :  { %s324_s0 = smov 64   ;;  %s325_s11 = smov 4  }
  0x22   :  { %33 = dma.hbm_to_vmem [thread:$0]  %s404_s1, 1024, %s354_s18, [#allocation7], %s324_s0, %s324_s0, %s325_s11  }
  0x23   :  { %316 = dma.done.wait [#allocation4], 64  }
  0x24   :  { %317 = vsyncadd [#allocation4], 4294967232 }
  0x25   :  { %318 = dma.done.wait [#allocation7], 1024  }
  0x26   :  { %319 = vsyncadd [#allocation7], 4294966272  ;;  %v326_v0 = vmov 0.0   ;;  %vm327_vm0 = vmmov 0   ;;  %v242_v1 = vld [vmem:[#allocation6] sm:$0xff]   ;;  %v243_v2 = vld [vmem:[#allocation6 + $0x8] sm:$0xff]  }
  0x27   :  { %215 = vmatprep.subr.bf16.mxu0 %v326_v0  ;;  %231 = vmatprep.mubr.msk.bf16.mxu0 %vm327_vm0, %v326_v0  ;;  %v244_v3 = vld [vmem:[#allocation6 + $0x10] sm:$0xff]   ;;  %v245_v4 = vld [vmem:[#allocation6 + $0x18] sm:$0xff]   ;;  %v246_v5 = vld [vmem:[#allocation6 + $0x20] sm:$0xff]   ;;  %s328_s17 = smov [#allocation8]  }
  0x28   :  { %216 = vmatpush3.bf16.msra.mxu0 %v242_v1  ;;  %v247_v6 = vld [vmem:[#allocation6 + $0x28] sm:$0xff]   ;;  %v248_v7 = vld [vmem:[#allocation6 + $0x30] sm:$0xff]   ;;  %v249_v8 = vld [vmem:[#allocation6 + $0x38] sm:$0xff]   ;;  %s186_s18 = sshll.u32 %s328_s17, 4  ;;  %s187_s18 = int_to_ptr.vmem [resolvable:$true] %s186_s18 }
  0x29   :  { %217 = vmatprep.subr.bf16.mxu0 %v326_v0  ;;  %v51_v9 = vld [vmem:[#allocation3] sm:$0xf]  ;;  %s294_s19 = scalar_lea.vmem %s187_s18, 128  ;;  %p299_p3 = scmp.lt.s32.totalorder %s187_s18, %s187_s18 }
  0x2a   :  { %v204_v10 = vld [vmem:[%s405_s2] ss:$0 sm:$0xff]  ;;  %p295_p2 = scmp.ne.s32.totalorder %s187_s18, %s294_s19  ;;  %p300_p4 = scmp.lt.s32.totalorder %s294_s19, %s294_s19 }
  0x2b   :  { %v205_v12 = vld [vmem:[%s406_s3] ss:$0 sm:$0xff] }
  0x2c   :  { %218 = vmatpush3.bf16.msra.mxu0 %v243_v2  ;;  %p301_p5 = por %p300_p4, %p299_p3 }
  0x2d   :  { %219 = vmatprep.subr.bf16.mxu0 %v326_v0 }
  0x2e   :  { %p302_p6 = pnand %p301_p5, %p295_p2 }
  0x30   :  { %220 = vmatpush3.bf16.msra.mxu0 %v244_v3 }
  0x31   :  { %221 = vmatprep.subr.bf16.mxu0 %v326_v0 }
  0x34   :  { %222 = vmatpush3.bf16.msra.mxu0 %v245_v4 }
  0x35   :  { %223 = vmatprep.subr.bf16.mxu0 %v326_v0 }
  0x38   :  { %224 = vmatpush3.bf16.msra.mxu0 %v246_v5 }
  0x39   :  { %225 = vmatprep.subr.bf16.mxu0 %v326_v0 }
  0x3c   :  { %226 = vmatpush3.bf16.msra.mxu0 %v247_v6 }
  0x3d   :  { %227 = vmatprep.subr.bf16.mxu0 %v326_v0 }
  0x40   :  { %228 = vmatpush3.bf16.msra.mxu0 %v248_v7 }
  0x41   :  { %229 = vmatprep.subr.bf16.mxu0 %v326_v0 }
  0x44   :  { %230 = vmatpush3.bf16.msra.mxu0 %v249_v8 }
  0x47   :  { %232 = vmatmul.mubr.bf16.vlgmr.msra.gmra.mrb[0].mxu0 %v51_v9 }
 0x11a   :  { %v150_v11 = vpop.f32.mrb[0].mxu0 }
 0x11b   :  { %v169_v13 = vmul.f32 %v204_v10, %v150_v11  ;;  %v233_v14 = vpop.f32.mrb[1].mxu0 }
 0x11c   :  { %v153_v15 = vpop.f32.mrb[2].mxu0 }
 0x11d   :  { %v177_v16 = vadd.f32 %v205_v12, %v169_v13  ;;  %v234_v17 = vpop.f32.mrb[3].mxu0 }
 0x11f   :  { %v178_v18 = vmax.f32 %v177_v16, 0.0 }
 0x121   :  { %179 = vst [vmem:[#allocation8] sm:$0xff] %v178_v18 }
 0x122   :  { %305 = shalt.err (!%p302_p6)
}
 0x123   :  { %s306_s3 = scalar_lea.hbm %s407_s4, 128 }
 0x124   :  { %p307_p7 = scmp.ne.s32.totalorder %s407_s4, %s306_s3  ;;  %p310_p8 = scmp.lt.u32.totalorder %s306_s3, %s407_s4 }
 0x126   :  { %p312_p9 = pnand %p310_p8, %p307_p7 }
 0x128   :  { %315 = shalt.err (!%p312_p9)
}
 0x129   :  { %189 = dma.vmem_to_hbm [thread:$0]  %s187_s18, 128, %s407_s4, [#allocation5]  }
 0x12a   :  { %320 = dma.done.wait [#allocation5], 128  }
 0x12b   :  { %321 = vsyncadd [#allocation5], 4294967168 }
 0x12c   :  { %193 = vsyncpa [#allocation4], 1 }
 0x12d   :  { %194 = vsyncpa [#allocation7], 1 }
 0x12e   :  { %195 = vsyncpa [#allocation5], 1 }

</bundles_post_ra>
